<compile_context>
chip_gen: v5e
topology: v5e:2x2
jax: 0.10.0
libtpu: 0.0.40
codegen_flags: <defaults>
</compile_context>

<pallas_src>
import functools

import jax
import jax.numpy as jnp
from jax.experimental import pallas as pl
from jax.experimental.pallas import tpu as pltpu


def _cdiv(a, b):
    return -(-a // b)


def _fbeta_kernel(x_ref, y_ref, out_ref, *, beta, small_value):
    """One (1, C, TR, 128) tile of logits/labels -> (1, 1, 8, 128) partial fs sum."""
    _, C, TR, L = x_ref.shape

    x = x_ref[...].reshape(C, TR, L).astype(jnp.float32)
    lbl = y_ref[...].reshape(C, TR, L).astype(jnp.float32)

    # sigmoid (explicit form; saturates correctly for large |x|)
    p = 1.0 / (1.0 + jnp.exp(-x))

    # Reductions over the class axis = elementwise adds of (TR, 128) planes.
    num_pos = jnp.sum(p, axis=0) + small_value          # (TR, 128)
    num_pos_hat = jnp.sum(lbl, axis=0) + small_value    # (TR, 128)
    tp = jnp.sum(lbl * p, axis=0)                       # (TR, 128)

    precise = tp / num_pos
    recall = tp / num_pos_hat
    b2 = beta * beta
    fs = (1.0 + b2) * precise * recall / (b2 * precise + recall + small_value)

    # vreg-shaped partial: sublane-group adds only; the cross-lane reduce is
    # deferred to a tiny jnp.sum over the (B, NS, 8, 128) partials outside.
    partial = jnp.sum(fs.reshape(TR // 8, 8, L), axis=0)     # (8, 128)
    out_ref[...] = partial.reshape(1, 1, 8, L)


def fbeta_loss(logits, labels, beta=2.0, small_value=1e-6,
               target_block_bytes=2 * 1024 * 1024):
    """Pallas TPU FbetaLoss: logits/labels (B, C, *spatial) -> scalar f32."""
    assert logits.shape == labels.shape, (logits.shape, labels.shape)
    B = logits.shape[0]
    C = logits.shape[1]
    S = 1
    for d in logits.shape[2:]:
        S *= d

    x = logits.reshape(B, C, S)
    lbl = labels.reshape(B, C, S)

    # ---- tile selection: spatial on lanes, multi-MB lane-dense blocks ----
    itemsize = jnp.dtype(logits.dtype).itemsize
    nr = _cdiv(S, 128)                         # 128-lane rows needed
    nr8 = _cdiv(nr, 8) * 8                     # rounded to sublane multiple
    tr_target = max(8, (target_block_bytes // (C * 128 * itemsize)) // 8 * 8)
    if nr8 <= tr_target:
        TR, NS = nr8, 1                        # single spatial block per batch
    else:
        TR = tr_target
        NS = _cdiv(nr8, TR)
    nr_pad = NS * TR
    S_pad = nr_pad * 128

    # Zero padding is exact: padded positions have labels==0 -> tp==0 -> fs==0.
    if S_pad != S:
        x = jnp.pad(x, ((0, 0), (0, 0), (0, S_pad - S)))
        lbl = jnp.pad(lbl, ((0, 0), (0, 0), (0, S_pad - S)))
    x = x.reshape(B, C, nr_pad, 128)
    lbl = lbl.reshape(B, C, nr_pad, 128)

    kernel = functools.partial(
        _fbeta_kernel, beta=float(beta), small_value=float(small_value))

    partials = pl.pallas_call(
        kernel,
        out_shape=jax.ShapeDtypeStruct((B, NS, 8, 128), jnp.float32),
        grid_spec=pltpu.PrefetchScalarGridSpec(
            num_scalar_prefetch=0,
            grid=(B, NS),
            in_specs=[
                pl.BlockSpec((1, C, TR, 128), lambda b, j: (b, 0, j, 0)),
                pl.BlockSpec((1, C, TR, 128), lambda b, j: (b, 0, j, 0)),
            ],
            out_specs=pl.BlockSpec((1, 1, 8, 128), lambda b, j: (b, j, 0, 0)),
        ),
        compiler_params=pltpu.CompilerParams(
            dimension_semantics=("parallel", "parallel"),
            vmem_limit_bytes=48 * 1024 * 1024,
        ),
    )(x, lbl)

    fs_sum = jnp.sum(partials)
    return 1.0 - fs_sum / jnp.float32(B)


def _fbeta_ref(logits, labels, beta=2.0, eps=1e-6):
    """Plain-JAX reference, same math as the PyTorch module."""
    p = jax.nn.sigmoid(logits)
    num_pos = jnp.sum(p, axis=1) + eps
    num_pos_hat = jnp.sum(labels, axis=1) + eps
    tp = jnp.sum(labels * p, axis=1)
    precise = tp / num_pos
    recall = tp / num_pos_hat
    b2 = beta * beta
    fs = (1.0 + b2) * precise * recall / (b2 * precise + recall + eps)
    return 1.0 - jnp.sum(fs) / logits.shape[0]


if __name__ == "__main__":
    key = jax.random.PRNGKey(0)
    k1, k2, k3, k4 = jax.random.split(key, 4)

    # Segmentation-style 4D input (B, C, H, W); reduction runs over dim 1.
    N, C, H, W = 2, 4, 16, 16
    logits = jax.random.normal(k1, (N, C, H, W), dtype=jnp.float32)
    labels = (jax.random.uniform(k2, (N, C, H, W)) > 0.5).astype(jnp.float32)

    loss = jax.block_until_ready(fbeta_loss(logits, labels, beta=2.0))
    ref = _fbeta_ref(logits, labels, beta=2.0)
    assert jnp.allclose(loss, ref, atol=2e-5, rtol=1e-5), (loss, ref)

    # Multilabel-style 2D input (B, C) also exercises the padding path.
    B2, C2 = 4, 10
    logits2 = jax.random.normal(k3, (B2, C2), dtype=jnp.float32)
    labels2 = (jax.random.uniform(k4, (B2, C2)) > 0.5).astype(jnp.float32)

    loss2 = jax.block_until_ready(fbeta_loss(logits2, labels2, beta=2.0))
    ref2 = _fbeta_ref(logits2, labels2, beta=2.0)
    assert jnp.allclose(loss2, ref2, atol=2e-5, rtol=1e-5), (loss2, ref2)

    print("KERNEL_OK")
</pallas_src>

<mosaic_0001>
module attributes {stable_mosaic.version = 11 : i64} {
  func.func @_fbeta_kernel(%arg0: i32, %arg1: i32, %arg2: memref<1x4x8x128xf32, #tpu.memory_space<vmem>>, %arg3: memref<1x4x8x128xf32, #tpu.memory_space<vmem>>, %arg4: memref<1x1x8x128xf32, #tpu.memory_space<vmem>>) attributes {dimension_semantics = [#tpu.dimension_semantics<parallel>, #tpu.dimension_semantics<parallel>], iteration_bounds = array<i64: 2, 1>, scalar_prefetch = 0 : i64, scratch_operands = 0 : i64, tpu.core_type = #tpu.core_type<tc>, window_params = [{transform_indices = @transform_0, window_bounds = array<i64: 1, 4, 8, 128>}, {transform_indices = @transform_1, window_bounds = array<i64: 1, 4, 8, 128>}, {transform_indices = @transform_2, window_bounds = array<i64: 1, 1, 8, 128>}]} {
    %c0 = arith.constant 0 : index
    %c0_0 = arith.constant 0 : index
    %c0_1 = arith.constant 0 : index
    %c0_2 = arith.constant 0 : index
    %0 = vector.load %arg2[%c0, %c0_0, %c0_1, %c0_2] : memref<1x4x8x128xf32, #tpu.memory_space<vmem>>, vector<1x4x8x128xf32>
    %1 = vector.shape_cast %0 : vector<1x4x8x128xf32> to vector<4x8x128xf32>
    %c0_3 = arith.constant 0 : index
    %c0_4 = arith.constant 0 : index
    %c0_5 = arith.constant 0 : index
    %c0_6 = arith.constant 0 : index
    %2 = vector.load %arg3[%c0_3, %c0_4, %c0_5, %c0_6] : memref<1x4x8x128xf32, #tpu.memory_space<vmem>>, vector<1x4x8x128xf32>
    %3 = vector.shape_cast %2 : vector<1x4x8x128xf32> to vector<4x8x128xf32>
    %cst = arith.constant 0.000000e+00 : f32
    %4 = vector.broadcast %cst : f32 to vector<4x8x128xf32>
    %5 = arith.subf %4, %1 : vector<4x8x128xf32>
    %6 = math.exp %5 : vector<4x8x128xf32>
    %cst_7 = arith.constant 1.000000e+00 : f32
    %7 = vector.broadcast %cst_7 : f32 to vector<4x8x128xf32>
    %8 = arith.addf %7, %6 : vector<4x8x128xf32>
    %cst_8 = arith.constant 1.000000e+00 : f32
    %9 = vector.broadcast %cst_8 : f32 to vector<4x8x128xf32>
    %10 = arith.divf %9, %8 : vector<4x8x128xf32>
    %cst_9 = arith.constant dense<0.000000e+00> : vector<8x128xf32>
    %11 = vector.multi_reduction <add>, %10, %cst_9 [0] : vector<4x8x128xf32> to vector<8x128xf32>
    %cst_10 = arith.constant 9.99999997E-7 : f32
    %12 = vector.broadcast %cst_10 : f32 to vector<8x128xf32>
    %13 = arith.addf %11, %12 : vector<8x128xf32>
    %cst_11 = arith.constant dense<0.000000e+00> : vector<8x128xf32>
    %14 = vector.multi_reduction <add>, %3, %cst_11 [0] : vector<4x8x128xf32> to vector<8x128xf32>
    %cst_12 = arith.constant 9.99999997E-7 : f32
    %15 = vector.broadcast %cst_12 : f32 to vector<8x128xf32>
    %16 = arith.addf %14, %15 : vector<8x128xf32>
    %17 = arith.mulf %3, %10 : vector<4x8x128xf32>
    %cst_13 = arith.constant dense<0.000000e+00> : vector<8x128xf32>
    %18 = vector.multi_reduction <add>, %17, %cst_13 [0] : vector<4x8x128xf32> to vector<8x128xf32>
    %19 = arith.divf %18, %13 : vector<8x128xf32>
    %20 = arith.divf %18, %16 : vector<8x128xf32>
    %cst_14 = arith.constant 5.000000e+00 : f32
    %21 = vector.broadcast %cst_14 : f32 to vector<8x128xf32>
    %22 = arith.mulf %21, %19 : vector<8x128xf32>
    %23 = arith.mulf %22, %20 : vector<8x128xf32>
    %cst_15 = arith.constant 4.000000e+00 : f32
    %24 = vector.broadcast %cst_15 : f32 to vector<8x128xf32>
    %25 = arith.mulf %24, %19 : vector<8x128xf32>
    %26 = arith.addf %25, %20 : vector<8x128xf32>
    %cst_16 = arith.constant 9.99999997E-7 : f32
    %27 = vector.broadcast %cst_16 : f32 to vector<8x128xf32>
    %28 = arith.addf %26, %27 : vector<8x128xf32>
    %29 = arith.divf %23, %28 : vector<8x128xf32>
    %30 = vector.shape_cast %29 : vector<8x128xf32> to vector<1x8x128xf32>
    %cst_17 = arith.constant dense<0.000000e+00> : vector<8x128xf32>
    %31 = vector.multi_reduction <add>, %30, %cst_17 [0] : vector<1x8x128xf32> to vector<8x128xf32>
    %32 = vector.shape_cast %31 : vector<8x128xf32> to vector<1x1x8x128xf32>
    %c0_18 = arith.constant 0 : index
    %c0_19 = arith.constant 0 : index
    %c0_20 = arith.constant 0 : index
    %c0_21 = arith.constant 0 : index
    %33 = vector.load %arg4[%c0_18, %c0_19, %c0_20, %c0_21] : memref<1x1x8x128xf32, #tpu.memory_space<vmem>>, vector<1x1x8x128xf32>
    tpu.vector_store %arg4[%c0_18, %c0_19, %c0_20, %c0_21], %32 {strides = array<i32>} : memref<1x1x8x128xf32, #tpu.memory_space<vmem>>, vector<1x1x8x128xf32>,
    return
  }
  func.func @transform_0(%arg0: i32, %arg1: i32) -> (i32, i32, i32, i32) {
    %c0_i32 = arith.constant 0 : i32
    %c0_i32_0 = arith.constant 0 : i32
    %c0_i32_1 = arith.constant 0 : i32
    return %arg0, %c0_i32, %arg1, %c0_i32_0 : i32, i32, i32, i32
  }
  func.func @transform_1(%arg0: i32, %arg1: i32) -> (i32, i32, i32, i32) {
    %c0_i32 = arith.constant 0 : i32
    %c0_i32_0 = arith.constant 0 : i32
    %c0_i32_1 = arith.constant 0 : i32
    return %arg0, %c0_i32, %arg1, %c0_i32_0 : i32, i32, i32, i32
  }
  func.func @transform_2(%arg0: i32, %arg1: i32) -> (i32, i32, i32, i32) {
    %c0_i32 = arith.constant 0 : i32
    %c0_i32_0 = arith.constant 0 : i32
    %c0_i32_1 = arith.constant 0 : i32
    return %arg0, %arg1, %c0_i32, %c0_i32_0 : i32, i32, i32, i32
  }
}

</mosaic_0001>

<bundles_post_ra>
// kernel: tpu_custom_call.1
= control target key start
LH: loop header
LB: loop body
LE: loop exit
PB: predicated region body
PF: predicated region fallthrough
CT: control target
= control target key end

     0   :  { %7 = vsyncpa [#allocation3], 0  ;;  %s971_s0 = inlined_call_operand.hbm [shape: f32[2,4,8,128], index: 0, kind: input, shape index: {}]   ;;  %s972_s1 = inlined_call_operand.hbm [shape: f32[2,4,8,128], index: 1, kind: input, shape index: {}]   ;;  %s973_s2 = inlined_call_operand.hbm [shape: f32[2,1,8,128], index: 2, kind: output, shape index: {}]  }
   0x1   :  { %9 = vsyncpa [#allocation3 + $0x1], 0 }
   0x2   :  { %10 = vsyncpa [#allocation6], 0 }
   0x3   :  { %12 = vsyncpa [#allocation6 + $0x1], 0 }
   0x4   :  { %13 = vsyncpa [#allocation4], 0 }
   0x5   :  { %15 = vsyncpa [#allocation4 + $0x1], 0  ;;  %s776_s9 = smov 0   ;;  %s778_s10 = smov 0  }
   0x6   :  { %s780_s11 = smov 0   ;;  %s782_s12 = smov 0  }
   0x7   :  { %s784_s13 = smov 0   ;;  %s786_s14 = smov 0  }
   0x8 LB: > { %s500_s15 = sadd.s32 4294967295, %s757_s14   ;;  %s501_s16 = sadd.s32 4294967294, %s757_s14   ;;  %s757_s14 = sphi %s786_s14, %s21_s14   ;;  %s753_s13 = sphi %s784_s13, %s989_s13   ;;  %s749_s12 = sphi %s782_s12, %s988_s12   ;;  %s745_s11 = sphi %s780_s11, %s987_s11   ;;  %s741_s10 = sphi %s778_s10, %s986_s10   ;;  %s737_s9 = sphi %s776_s9, %s985_s9  }
   0x9   : > { %s33_s17 = sadd.s32 1, %s753_s13  ;;  %s42_s18 = sadd.s32 1, %s745_s11 }
   0xa   : > { %p35_p0 = scmp.ge.s32.totalorder %s33_s17, 2  ;;  %p49_p1 = scmp.ne.s32.totalorder %s745_s11, %s741_s10 }
   0xb   : > { %p50_p2 = scmp.eq.s32.totalorder %s757_s14, 0  ;;  %p55_p3 = scmp.ne.s32.totalorder %s741_s10, %s737_s9 }
   0xc   : > { %s991_s17 = smov (%p35_p0, %s33_s17), 0  ;;  %p56_p5 = scmp.eq.s32.totalorder %s500_s15, 0 }
   0xd   : > { %p817_p4 = por %p50_p2, %p49_p1  ;;  %s37_s20 = ssub.s32 %s753_s13, %s991_s17 }
   0xe   : > { %p109_p6 = scmp.eq.s32.totalorder %s500_s15, 1  ;;  %p40_p7 = scmp.eq.s32.totalorder %s37_s20, 0 }
   0xf   : > { %p823_p8 = por %p56_p5, %p55_p3  ;;  %p115_p10 = scmp.eq.s32.totalorder %s501_s16, 1 }
  0x10   : > { %p827_p9 = por %p109_p6, %p49_p1  ;;  %p503_p12 = scmp.ge.s32.totalorder %s757_s14, 2 }
  0x11   : > { %s832_s23 = scalar_select %p40_p7, %s745_s11, %s42_s18  }
  0x12   : > { %p834_p11 = por %p115_p10, %p55_p3  ;;  %p537_p13 = scmp.lt.s32.totalorder %s757_s14, 2 }
  0x13   : > { %s841_s25 = sand.u32 1, %s745_s11   ;;  %s518_s27 = sshll.u32 %s753_s13, 5 }
  0x14   : > { %s504_s26 = sshll.u32 %s841_s25, 5  ;;  %s145_s30 = scalar_lea.hbm %s971_s0, %s518_s27 }
  0x15   : > { %s139_s3 = scalar_lea.vmem [#allocation2], %s504_s26  ;;  %s146_s5 = sshll.u32 %s145_s30, 4  ;;  %s147_s5 = int_to_ptr.hbm [resolvable:$true] %s146_s5 }
  0x16   : > { %s148_s4 = sshll.u32 %s139_s3, 4  ;;  %p850_p0 = pnand %p537_p13, %p817_p4  ;;  %s149_s4 = int_to_ptr.vmem [resolvable:$true] %s148_s4 }
  0x17   : > { %p510_p1 = scmp.ge.s32.totalorder %s757_s14, 1  ;;  %s136_s7 = scalar_lea.sflag [#allocation3], %s841_s25 }
  0x18   : > { %s759_s8 = smov 128   ;;  %s760_s15 = smov 8  }
  0x19   : > { %529 = dma.hbm_to_vmem [thread:$0]  (!%p850_p0), %s147_s5, 512, %s149_s4, %s136_s7, %s759_s8, %s759_s8, %s760_s15  }
  0x1a   : > { %p179_p2 = scmp.lt.s32.totalorder %s757_s14, 3  ;;  %s168_s20 = scalar_lea.hbm %s972_s1, %s518_s27 }
  0x1b   : > { %s169_s28 = sshll.u32 %s168_s20, 4  ;;  %s162_s19 = scalar_lea.vmem [#allocation5], %s504_s26  ;;  %s170_s28 = int_to_ptr.hbm [resolvable:$true] %s169_s28 }
  0x1c   : > { %p180_p3 = pnand %p510_p1, %p179_p2  ;;  %s171_s29 = sshll.u32 %s162_s19, 4  ;;  %s172_s29 = int_to_ptr.vmem [resolvable:$true] %s171_s29 }
  0x1d   : > { %s159_s30 = scalar_lea.sflag [#allocation6], %s841_s25  ;;  %s866_s3 = sand.u32 (!%p180_p3), 1, %s741_s10  }
  0x1e   : > { %532 = dma.hbm_to_vmem [thread:$0]  (!%p850_p0), %s170_s28, 512, %s172_s29, %s159_s30, %s759_s8, %s759_s8, %s760_s15  }
  0x1f   : > { %183 = sbr.rel (%p180_p3) target bundleno = 126 (0x7e), region = 28  ;;  %s511_s4 = sshll.u32 (!%p180_p3), %s866_s3, 5 }
  0x20   : > { %s186_s5 = scalar_lea.sflag (!%p180_p3), [#allocation3], %s866_s3  ;;  %s189_s7 = scalar_lea.vmem (!%p180_p3), [#allocation2], %s511_s4 }
  0x24   : > { %724 = dma.done.wait (%p823_p8), %s186_s5, 512  }
  0x25   : > { %726 = vsyncadd (%p823_p8), %s186_s5, 4294966784  ;;  %s196_s25 = scalar_lea.sflag [#allocation6], %s866_s3  ;;  %s199_s26 = scalar_lea.vmem [#allocation5], %s511_s4 }
  0x26   : > { %728 = dma.done.wait (%p823_p8), %s196_s25, 512  }
  0x27   : > { %730 = vsyncadd (%p823_p8), %s196_s25, 4294966784  ;;  %v226_v0 = vld [vmem:[%s189_s7] sm:$0xff]  ;;  %v227_v1 = vld [vmem:[%s189_s7 + $0x8] sm:$0xff]  ;;  %s513_s21 = sshll.u32 %s866_s3, 3  ;;  %s515_s27 = sshll.u32 %s749_s12, 3 }
  0x28   : > { %v228_v2 = vld [vmem:[%s189_s7 + $0x10] sm:$0xff]  ;;  %v229_v3 = vld [vmem:[%s189_s7 + $0x18] sm:$0xff]  ;;  %v879_v4 = vld [vmem:[%s199_s26] sm:$0xff]  ;;  %v234_v6 = vsub.f32 0.0, %v226_v0  ;;  %v235_v7 = vsub.f32 0.0, %v227_v1  ;;  %s389_s15 = scalar_lea.hbm %s973_s2, %s515_s27  ;;  %s225_s16 = scalar_lea.vmem [#allocation7], %s513_s21 }
  0x29   : > { %v881_v5 = vld [vmem:[%s199_s26 + $0x8] sm:$0xff]  ;;  %v236_v8 = vsub.f32 0.0, %v228_v2  ;;  %v237_v9 = vsub.f32 0.0, %v229_v3  ;;  %v885_v15 = vld [vmem:[%s199_s26 + $0x10] sm:$0xff]  ;;  %v888_v17 = vld [vmem:[%s199_s26 + $0x18] sm:$0xff]  ;;  %s391_s18 = sshll.u32 %s225_s16, 4  ;;  %s392_s18 = int_to_ptr.vmem [resolvable:$true] %s391_s18 }
  0x2a   : > { %v238_v10 = vmul.f32 1.442695, %v234_v6  ;;  %v240_v11 = vmul.f32 1.442695, %v235_v7  ;;  %v314_v14 = vadd.f32 %v881_v5, %v879_v4  ;;  %s393_s20 = sshll.u32 %s389_s15, 4  ;;  %s378_s12 = scalar_lea.sflag [#allocation4], %s866_s3  ;;  %s394_s20 = int_to_ptr.hbm [resolvable:$true] %s393_s20 }
  0x2b   : > { %v242_v12 = vmul.f32 1.442695, %v236_v8  ;;  %v244_v13 = vmul.f32 1.442695, %v237_v9  ;;  %s685_s28 = sshra.s32 %s394_s20, 4  ;;  %s691_s4 = scalar_lea.hbm %s973_s2, 16  ;;  %s686_s28 = int_to_ptr.hbm [resolvable:$true] %s685_s28 }
  0x2c   : > { %589 = vpow2.f32 %v238_v10  ;;  %v315_v16 = vadd.f32 %v314_v14, %v885_v15  ;;  %s687_s19 = scalar_lea.hbm %s686_s28, 8  ;;  %p692_p7 = scmp.lt.s32.totalorder %s686_s28, %s973_s2 }
  0x2d   : > { %591 = vpow2.f32 %v240_v11  ;;  %p688_p4 = scmp.ne.s32.totalorder %s686_s28, %s687_s19  ;;  %p693_p8 = scmp.lt.s32.totalorder %s691_s4, %s687_s19 }
  0x2e   : > { %593 = vpow2.f32 %v242_v12  ;;  %v316_v21 = vadd.f32 %v315_v16, %v888_v17 }
  0x2f   : > { %595 = vpow2.f32 %v244_v13  ;;  %p689_p5 = pnand %p688_p4, %p827_p9  ;;  %p694_p10 = por %p693_p8, %p692_p7 }
  0x30   : > { %v891_v27 = vadd.f32 1e-06, %v316_v21 }
  0x31   : > { %p690_p6 = pneg %p689_p5 }
  0x32   : > { %v590_v18 = vpop.eup %589 }
  0x33   : > { %v592_v19 = vpop.eup %591  ;;  %v246_v20 = vadd.f32 1.0, %v590_v18  ;;  %p695_p13 = pnand %p694_p10, %p690_p6 }
  0x34   : > { %v594_v22 = vpop.eup %593  ;;  %v247_v23 = vadd.f32 1.0, %v592_v19 }
  0x35   : > { %v596_v24 = vpop.eup %595  ;;  %v248_v25 = vadd.f32 1.0, %v594_v22  ;;  %597 = vrcp.f32 %v246_v20  ;;  %v259_v28 = vand.u32 2147483647, %v246_v20  ;;  %v261_v29 = vand.u32 2147483648, %v246_v20 }
  0x36   : > { %v249_v26 = vadd.f32 1.0, %v596_v24  ;;  %599 = vrcp.f32 %v247_v23  ;;  %v276_v31 = vand.u32 2147483648, %v247_v23  ;;  %vm255_vm0 = vweird.f32 %v246_v20 }
  0x37   : > { %601 = vrcp.f32 %v248_v25  ;;  %vm894_vm1 = vcmp.eq.f32.partialorder %v259_v28, 8.507059e+37  ;;  %vm270_vm2 = vweird.f32 %v247_v23  ;;  %v262_v36 = vor.u32 1.1754944e-38, %v261_v29 }
  0x38   : > { %603 = vrcp.f32 %v249_v26  ;;  %v274_v38 = vand.u32 2147483647, %v247_v23  ;;  %vm285_vm3 = vweird.f32 %v248_v25  ;;  %v289_v41 = vand.u32 2147483647, %v248_v25 }
  0x39   : > { %605 = vrcp.f32 %v891_v27  ;;  %v277_v44 = vor.u32 1.1754944e-38, %v276_v31  ;;  %v291_v45 = vand.u32 2147483648, %v248_v25  ;;  %vm300_vm8 = vweird.f32 %v249_v26 }
  0x3a   : > { %v304_v52 = vand.u32 2147483647, %v249_v26  ;;  %v306_v53 = vand.u32 2147483648, %v249_v26  ;;  %vm275_vm11 = vcmp.eq.f32.partialorder %v274_v38, 8.507059e+37  ;;  %vm290_vm13 = vcmp.eq.f32.partialorder %v289_v41, 8.507059e+37 }
  0x3b   : > { %v598_v30 = vpop.eup %597  ;;  %v292_v59 = vor.u32 1.1754944e-38, %v291_v45  ;;  %v351_v24 = vand.u32 2147483648, %v891_v27 }
  0x3c   : > { %v600_v32 = vpop.eup %599  ;;  %v251_v33 = vmul.f32 %v598_v30, %v246_v20  ;;  %vm256_vm4 = vweird.f32 %v598_v30  ;;  %v307_v1 = vor.u32 1.1754944e-38, %v306_v53  ;;  %vm305_vm15 = vcmp.eq.f32.partialorder %v304_v52, 8.507059e+37 }
  0x3d   : > { %v602_v35 = vpop.eup %601  ;;  %v266_v37 = vmul.f32 %v600_v32, %v247_v23  ;;  %vm271_vm5 = vweird.f32 %v600_v32  ;;  %vm901_vm7 = vmor %vm255_vm0, %vm256_vm4  ;;  %vm345_vm0 = vweird.f32 %v891_v27  ;;  %v352_v31 = vor.u32 1.1754944e-38, %v351_v24 }
  0x3e   : > { %v252_v39 = vsub.f32 1.0, %v251_v33  ;;  %v281_v40 = vmul.f32 %v602_v35, %v248_v25  ;;  %v604_v42 = vpop.eup %603  ;;  %vm286_vm6 = vweird.f32 %v602_v35  ;;  %vm906_vm9 = vmor %vm270_vm2, %vm271_vm5 }
  0x3f   : > { %v267_v43 = vsub.f32 1.0, %v266_v37  ;;  %v296_v48 = vmul.f32 %v604_v42, %v249_v26  ;;  %v898_v49 = vpop.eup %605  ;;  %vm301_vm10 = vweird.f32 %v604_v42  ;;  %vm287_vm12 = vmor %vm285_vm3, %vm286_vm6 }
  0x40   : > { %v253_v46 = vmul.f32 %v598_v30, %v252_v39  ;;  %v282_v47 = vsub.f32 1.0, %v281_v40  ;;  %vm302_vm14 = vmor %vm300_vm8, %vm301_vm10  ;;  %v341_v12 = vmul.f32 %v898_v49, %v891_v27 }
  0x41   : > { %v268_v51 = vmul.f32 %v600_v32, %v267_v43  ;;  %v297_v57 = vsub.f32 1.0, %v296_v48 }
  0x42   : > { %v254_v54 = vadd.f32 %v598_v30, %v253_v46  ;;  %v283_v56 = vmul.f32 %v602_v35, %v282_v47  ;;  %v342_v16 = vsub.f32 1.0, %v341_v12 }
  0x43   : > { %v269_v58 = vadd.f32 %v600_v32, %v268_v51  ;;  %v298_v62 = vmul.f32 %v604_v42, %v297_v57 }
  0x44   : > { %v258_v60 = vsel %vm901_vm7, %v598_v30, %v254_v54  ;;  %v284_v61 = vadd.f32 %v602_v35, %v283_v56  ;;  %v343_v20 = vmul.f32 %v898_v49, %v342_v16 }
  0x45   : > { %v263_v63 = vsel %vm894_vm1, %v262_v36, %v258_v60  ;;  %v273_v0 = vsel %vm906_vm9, %v600_v32, %v269_v58  ;;  %v299_v6 = vadd.f32 %v604_v42, %v298_v62  ;;  %vm346_vm1 = vweird.f32 %v898_v49 }
  0x46   : > { %v278_v2 = vsel %vm275_vm11, %v277_v44, %v273_v0  ;;  %v288_v3 = vsel %vm287_vm12, %v602_v35, %v284_v61  ;;  %v318_v18 = vmul.f32 %v263_v63, %v879_v4  ;;  %v344_v26 = vadd.f32 %v898_v49, %v343_v20  ;;  %vm347_vm2 = vmor %vm345_vm0, %vm346_vm1 }
  0x47   : > { %v293_v7 = vsel %vm290_vm13, %v292_v59, %v288_v3  ;;  %v310_v8 = vadd.f32 %v278_v2, %v263_v63  ;;  %v303_v9 = vsel %vm302_vm14, %v604_v42, %v299_v6  ;;  %v319_v19 = vmul.f32 %v278_v2, %v881_v5 }
  0x48   : > { %v308_v10 = vsel %vm305_vm15, %v307_v1, %v303_v9  ;;  %v320_v21 = vmul.f32 %v293_v7, %v885_v15  ;;  %v349_v4 = vand.u32 2147483647, %v891_v27  ;;  %v348_v33 = vsel %vm347_vm2, %v898_v49, %v344_v26 }
  0x49   : > { %v311_v11 = vadd.f32 %v310_v8, %v293_v7  ;;  %v322_v22 = vadd.f32 %v319_v19, %v318_v18  ;;  %v321_v5 = vmul.f32 %v308_v10, %v888_v17 }
  0x4a   : > { %vm350_vm5 = vcmp.eq.f32.partialorder %v349_v4, 8.507059e+37 }
  0x4b   : > { %v312_v13 = vadd.f32 %v311_v11, %v308_v10  ;;  %v323_v28 = vadd.f32 %v322_v22, %v320_v21  ;;  %v353_v17 = vsel %vm350_vm5, %v352_v31, %v348_v33 }
  0x4d   : > { %v313_v14 = vadd.f32 1e-06, %v312_v13  ;;  %v324_v35 = vadd.f32 %v323_v28, %v321_v5 }
  0x4f   : > { %607 = vrcp.f32 %v313_v14  ;;  %v336_v29 = vand.u32 2147483648, %v313_v14  ;;  %vm330_vm3 = vweird.f32 %v313_v14  ;;  %v334_v15 = vand.u32 2147483647, %v313_v14 }
  0x50   : > { %v354_v39 = vmul.f32 %v353_v17, %v324_v35 }
  0x51   : > { %v337_v34 = vor.u32 1.1754944e-38, %v336_v29  ;;  %vm335_vm7 = vcmp.eq.f32.partialorder %v334_v15, 8.507059e+37 }
  0x55   : > { %v608_v23 = vpop.eup %607 }
  0x56   : > { %v326_v25 = vmul.f32 %v608_v23, %v313_v14  ;;  %vm331_vm4 = vweird.f32 %v608_v23 }
  0x57   : > { %vm332_vm6 = vmor %vm330_vm3, %vm331_vm4 }
  0x58   : > { %v327_v30 = vsub.f32 1.0, %v326_v25 }
  0x5a   : > { %v328_v32 = vmul.f32 %v608_v23, %v327_v30 }
  0x5c   : > { %v329_v36 = vadd.f32 %v608_v23, %v328_v32 }
  0x5e   : > { %v333_v27 = vsel %vm332_vm6, %v608_v23, %v329_v36 }
  0x5f   : > { %v338_v37 = vsel %vm335_vm7, %v337_v34, %v333_v27 }
  0x60   : > { %v339_v38 = vmul.f32 %v338_v37, %v324_v35 }
  0x62   : > { %v357_v40 = vmul.f32 4.0, %v339_v38  ;;  %v355_v45 = vmul.f32 5.0, %v339_v38 }
  0x64   : > { %v358_v41 = vadd.f32 %v357_v40, %v354_v39  ;;  %v356_v51 = vmul.f32 %v355_v45, %v354_v39 }
  0x66   : > { %v359_v42 = vadd.f32 1e-06, %v358_v41 }
  0x68   : > { %609 = vrcp.f32 %v359_v42  ;;  %v371_v46 = vand.u32 2147483648, %v359_v42  ;;  %vm365_vm8 = vweird.f32 %v359_v42  ;;  %v369_v48 = vand.u32 2147483647, %v359_v42 }
  0x6a   : > { %v372_v50 = vor.u32 1.1754944e-38, %v371_v46  ;;  %vm370_vm11 = vcmp.eq.f32.partialorder %v369_v48, 8.507059e+37 }
  0x6e   : > { %v610_v43 = vpop.eup %609 }
  0x6f   : > { %v361_v44 = vmul.f32 %v610_v43, %v359_v42  ;;  %vm366_vm9 = vweird.f32 %v610_v43 }
  0x70   : > { %vm367_vm10 = vmor %vm365_vm8, %vm366_vm9 }
  0x71   : > { %v362_v47 = vsub.f32 1.0, %v361_v44 }
  0x73   : > { %v363_v49 = vmul.f32 %v610_v43, %v362_v47 }
  0x75   : > { %v364_v52 = vadd.f32 %v610_v43, %v363_v49 }
  0x77   : > { %v368_v53 = vsel %vm367_vm10, %v610_v43, %v364_v52 }
  0x78   : > { %v373_v54 = vsel %vm370_vm11, %v372_v50, %v368_v53 }
  0x79   : > { %v374_v55 = vmul.f32 %v373_v54, %v356_v51 }
  0x7b   : > { %376 = vst [vmem:[%s225_s16] sm:$0xff] %v374_v55 }
  0x7c   : > { %698 = shalt.err (!%p695_p13)
}
  0x7d   : > { %524 = dma.vmem_to_hbm [thread:$0]  (%p827_p9), %s392_s18, 128, %s394_s20, %s378_s12  }
  0x7e PF: > { %s405_s3 = sand.u32 1, %s737_s9   ;;  %p534_p0 = pnand %p503_p12, %p834_p11 }
  0x7f   : > { %s406_s25 = scalar_lea.sflag [#allocation4], %s405_s3 }
  0x80   : > { %p535_p1 = pneg %p534_p0 }
  0x82   : > { %732 = dma.done.wait (%p535_p1), %s406_s25, 128  }
  0x83   : > { %734 = vsyncadd (%p535_p1), %s406_s25, 4294967168  ;;  %s21_s14 = sadd.s32 1, %s757_s14   ;;  %s985_s9 = smov %s741_s10 }
  0x84   : > { %p18_p2 = scmp.ge.s32.totalorder %s21_s14, 4   ;;  %s986_s10 = smov %s745_s11 }
  0x85   : > { %s987_s11 = smov %s832_s23  ;;  %s988_s12 = smov %s753_s13 }
  0x86   : > { %s989_s13 = smov %s991_s17  ;;  %20 = sbr.rel (!%p18_p2) target bundleno = 8 (0x8), region = 86 }
  0x8b   :  { %412 = vsyncpa [#allocation3], 1 }
  0x8c   :  { %414 = vsyncpa [#allocation3 + $0x1], 1 }
  0x8d   :  { %415 = vsyncpa [#allocation6], 1 }
  0x8e   :  { %417 = vsyncpa [#allocation6 + $0x1], 1 }
  0x8f   :  { %418 = vsyncpa [#allocation4], 1 }
  0x90   :  { %420 = vsyncpa [#allocation4 + $0x1], 1 }

</bundles_post_ra>
